<compile_context>
chip_gen: v5e
topology: v5e:2x2
jax: 0.10.0
libtpu: 0.0.40
codegen_flags: <defaults>
</compile_context>

<pallas_src>
import functools

import jax
import jax.numpy as jnp
from jax import lax
from jax.experimental import pallas as pl
from jax.experimental.pallas import tpu as pltpu

LEAKY_SLOPE = 0.01
BN_EPS = 1e-5


def _round_up(x, m):
    return (x + m - 1) // m * m


# ---------------------------------------------------------------------------
# In-kernel epilogue: BatchNorm1d (training mode) folded to scale/shift + LeakyReLU
# ---------------------------------------------------------------------------
def _bn_lrelu_epilogue(y, gamma, beta, n_live):
    inv_n = 1.0 / n_live
    s = jnp.sum(y, axis=0, keepdims=True)
    ss = jnp.sum(y * y, axis=0, keepdims=True)
    mean = s * inv_n
    # Clamp: E[y^2] - E[y]^2 can go slightly negative from f32 cancellation.
    var = jnp.maximum(ss * inv_n - mean * mean, 0.0)
    scale = gamma * lax.rsqrt(var + BN_EPS)       # rsqrt -> EUP slot
    shift = beta - mean * scale
    z = y * scale + shift
    return jnp.where(z >= 0, z, LEAKY_SLOPE * z)


# ---------------------------------------------------------------------------
# Single-layer kernel (one fused pallas_call per GCNLayer.forward)
# ---------------------------------------------------------------------------
def _gcn_layer_kernel(n_live, a_ref, rs_ref, h_ref, w_ref, b_ref, g_ref,
                      bt_ref, o_ref):
    # X = H @ W        (MXU, bf16 operands, f32 accumulation)
    x = jnp.dot(h_ref[...], w_ref[...], preferred_element_type=jnp.float32)
    # Y = A_norm @ X   (MXU, bf16 operands, f32 accumulation)
    y = jnp.dot(a_ref[...], x.astype(a_ref.dtype),
                preferred_element_type=jnp.float32)
    # Linear bias in the f32 epilogue:  A@(X + 1 b^T) = A@X + rowsum(A) b^T
    y = y + rs_ref[...] * b_ref[...]
    o_ref[...] = _bn_lrelu_epilogue(y, g_ref[...], bt_ref[...],
                                    n_live).astype(o_ref.dtype)


def gcn_layer_forward(a_p, row_sum, h_p, w_p, b_p, g_p, bt_p, *,
                      out_dtype=jnp.float32):
    """One GCNLayer forward on pre-padded / pre-cast tensors.

    a_p:     (N, NK)  bf16, zero-padded columns
    row_sum: (N, 1)   f32, rowsum of the unpadded A_norm
    h_p:     (NK, DK) bf16, zero-padded
    w_p:     (DK, DN) bf16, zero-padded (torch W already transposed)
    b_p, g_p, bt_p: (1, DN) f32
    Returns the lane-padded (N, DN) output (unpad once at the end).
    """
    n, nk = a_p.shape
    nk2, dk = h_p.shape
    dk2, dn = w_p.shape
    assert nk2 == nk and dk2 == dk

    full = lambda shape: pl.BlockSpec(shape, lambda: (0,) * len(shape))
    return pl.pallas_call(
        functools.partial(_gcn_layer_kernel, n),
        out_shape=jax.ShapeDtypeStruct((n, dn), out_dtype),
        grid=(),
        in_specs=[
            full((n, nk)),    # A_norm
            full((n, 1)),     # rowsum(A_norm)
            full((nk, dk)),   # H
            full((dk, dn)),   # W^T
            full((1, dn)),    # bias
            full((1, dn)),    # gamma
            full((1, dn)),    # beta
        ],
        out_specs=full((n, dn)),
    )(a_p, row_sum, h_p, w_p, b_p, g_p, bt_p)


# ---------------------------------------------------------------------------
# Fused L-layer stack: ONE pallas_call, activation kept in VMEM across layers
# ---------------------------------------------------------------------------
def _gcn_stack_kernel(n_live, a_ref, rs_ref, h0_ref, w_ref, b_ref, g_ref,
                      bt_ref, o_ref, act_ref):
    layer = pl.program_id(0)

    @pl.when(layer == 0)
    def _():
        act_ref[...] = h0_ref[...]      # padded rows [n_live:] are zeros

    x = jnp.dot(act_ref[...], w_ref[...], preferred_element_type=jnp.float32)
    y = jnp.dot(a_ref[...], x.astype(a_ref.dtype),
                preferred_element_type=jnp.float32)
    y = y + rs_ref[...] * b_ref[...]
    z = _bn_lrelu_epilogue(y, g_ref[...], bt_ref[...], n_live)

    o_ref[...] = z.astype(o_ref.dtype)

    @pl.when(layer + 1 < pl.num_programs(0))
    def _():
        # Next layer's H, kept lane-padded and bf16 in VMEM (no HBM round trip).
        act_ref[0:n_live, :] = z.astype(act_ref.dtype)


def gcn_stack_forward(a_p, row_sum, h_p, w_stack, b_stack, g_stack, bt_stack,
                      *, out_dtype=jnp.float32):
    """L stacked GCN layers (shared A, equal padded width) in one pallas_call."""
    n, nk = a_p.shape
    num_layers, dp, dp2 = w_stack.shape
    assert dp == dp2 and h_p.shape == (nk, dp)

    return pl.pallas_call(
        functools.partial(_gcn_stack_kernel, n),
        out_shape=jax.ShapeDtypeStruct((n, dp), out_dtype),
        grid_spec=pltpu.PrefetchScalarGridSpec(
            num_scalar_prefetch=0,
            grid=(num_layers,),
            in_specs=[
                pl.BlockSpec((n, nk), lambda l: (0, 0)),        # A_norm
                pl.BlockSpec((n, 1), lambda l: (0, 0)),         # rowsum(A)
                pl.BlockSpec((nk, dp), lambda l: (0, 0)),       # H (layer 0)
                pl.BlockSpec((None, dp, dp), lambda l: (l, 0, 0)),  # W_l
                pl.BlockSpec((None, 1, dp), lambda l: (l, 0, 0)),   # b_l
                pl.BlockSpec((None, 1, dp), lambda l: (l, 0, 0)),   # gamma_l
                pl.BlockSpec((None, 1, dp), lambda l: (l, 0, 0)),   # beta_l
            ],
            out_specs=pl.BlockSpec((n, dp), lambda l: (0, 0)),
            scratch_shapes=[pltpu.VMEM((nk, dp), h_p.dtype)],   # activation
        ),
        compiler_params=pltpu.CompilerParams(
            dimension_semantics=("arbitrary",)),   # layers are sequential
    )(a_p, row_sum, h_p, w_stack, b_stack, g_stack, bt_stack)


# ---------------------------------------------------------------------------
# One-time parameter preparation (hoisted out of the hot path)
# ---------------------------------------------------------------------------
def normalize_adjacency(a):
    """A_norm = D^{-1/2} A D^{-1/2}  (matches `noramlize` applied to A + I)."""
    d = a.sum(axis=1)
    d_inv_sqrt = jnp.power(d, -0.5)
    return (a * d_inv_sqrt[:, None]) * d_inv_sqrt[None, :]


def prepare_adjacency(adj, *, matmul_dtype=jnp.bfloat16):
    """One-time: A_norm = normalize(A + I), lane-padded bf16, plus f32 rowsum."""
    n = adj.shape[0]
    a_norm = normalize_adjacency(adj + jnp.eye(n, dtype=adj.dtype))
    nk = _round_up(n, 128)   # contraction dim of A@X / lane dim of A
    a_p = (jnp.zeros((n, nk), jnp.float32).at[:, :n].set(a_norm)
           .astype(matmul_dtype))
    row_sum = a_norm.sum(axis=1).reshape(n, 1).astype(jnp.float32)
    return a_p, row_sum, a_norm


def prepare_layer_params(w, b, gamma, beta, *, d_pad_in, d_pad_out,
                         matmul_dtype=jnp.bfloat16):
    """One-time padding + casts of per-layer parameters.  w is torch (d_out, d_in)."""
    d_out, d_in = w.shape
    w_p = (jnp.zeros((d_pad_in, d_pad_out), jnp.float32)
           .at[:d_in, :d_out].set(w.T).astype(matmul_dtype))
    b_p = jnp.zeros((1, d_pad_out), jnp.float32).at[:, :d_out].set(b.reshape(1, -1))
    g_p = jnp.ones((1, d_pad_out), jnp.float32).at[:, :d_out].set(gamma.reshape(1, -1))
    bt_p = jnp.zeros((1, d_pad_out), jnp.float32).at[:, :d_out].set(beta.reshape(1, -1))
    return w_p, b_p, g_p, bt_p


def pad_activations(h, *, n_pad, d_pad, dtype=jnp.bfloat16):
    n, d = h.shape
    return jnp.zeros((n_pad, d_pad), jnp.float32).at[:n, :d].set(h).astype(dtype)


# ---------------------------------------------------------------------------
# Demo / correctness checks
# ---------------------------------------------------------------------------
def _ref_layer_f32(a_norm, h, w, b, gamma, beta):
    """Torch-equivalent f32 forward of one GCNLayer."""
    x = h @ w.T + b[None, :]
    y = a_norm @ x
    m = y.mean(0, keepdims=True)
    v = ((y - m) ** 2).mean(0, keepdims=True)
    z = (y - m) / jnp.sqrt(v + BN_EPS) * gamma[None, :] + beta[None, :]
    return jnp.where(z >= 0, z, LEAKY_SLOPE * z)


if __name__ == "__main__":
    key = jax.random.PRNGKey(0)
    k_a, k_h, k_w1, k_b1, k_w2, k_b2 = jax.random.split(key, 6)

    N, D_IN, D_OUT = 16, 32, 32

    # Random symmetric binary adjacency (no self loops); GCNLayer adds I itself.
    upper = (jax.random.uniform(k_a, (N, N)) > 0.7).astype(jnp.float32)
    adj = jnp.triu(upper, 1)
    adj = adj + adj.T

    h = jax.random.normal(k_h, (N, D_IN), dtype=jnp.float32)

    # Two layers' worth of parameters (torch Linear layout: (d_out, d_in)).
    w1 = jax.random.normal(k_w1, (D_OUT, D_IN), jnp.float32) * 0.1
    b1 = jax.random.normal(k_b1, (D_OUT,), jnp.float32) * 0.1
    w2 = jax.random.normal(k_w2, (D_OUT, D_OUT), jnp.float32) * 0.1
    b2 = jax.random.normal(k_b2, (D_OUT,), jnp.float32) * 0.1
    gamma1 = jnp.ones((D_OUT,), jnp.float32); beta1 = jnp.zeros((D_OUT,), jnp.float32)
    gamma2 = jnp.ones((D_OUT,), jnp.float32); beta2 = jnp.zeros((D_OUT,), jnp.float32)

    # ---- one-time init (padding / casts hoisted out of the hot path) ----
    a_p, row_sum, a_norm = prepare_adjacency(adj)
    NK = a_p.shape[1]
    DP = _round_up(max(D_IN, D_OUT), 128)
    w1_p, b1_p, g1_p, bt1_p = prepare_layer_params(
        w1, b1, gamma1, beta1, d_pad_in=DP, d_pad_out=DP)
    w2_p, b2_p, g2_p, bt2_p = prepare_layer_params(
        w2, b2, gamma2, beta2, d_pad_in=DP, d_pad_out=DP)
    h_p = pad_activations(h, n_pad=NK, d_pad=DP)

    # ---- single GCNLayer forward: one fused pallas_call (the module) ----
    layer_fwd = jax.jit(gcn_layer_forward)
    out1_padded = layer_fwd(a_p, row_sum, h_p, w1_p, b1_p, g1_p, bt1_p)
    jax.block_until_ready(out1_padded)
    out1 = out1_padded[:, :D_OUT]
    assert out1.shape == (N, D_OUT)

    # Tight check: reference with the same bf16 matmul operands as the kernel.
    bf = jnp.bfloat16
    x_c = jnp.dot(h.astype(bf), w1.T.astype(bf), preferred_element_type=jnp.float32)
    y_c = jnp.dot(a_norm.astype(bf), x_c.astype(bf), preferred_element_type=jnp.float32)
    y_c = y_c + a_norm.sum(1, keepdims=True) * b1[None, :]
    m_c = y_c.mean(0, keepdims=True)
    v_c = jnp.maximum((y_c * y_c).mean(0, keepdims=True) - m_c * m_c, 0.0)
    z_c = (y_c - m_c) * (gamma1[None, :] * lax.rsqrt(v_c + BN_EPS)) + beta1[None, :]
    ref_tight = jnp.where(z_c >= 0, z_c, LEAKY_SLOPE * z_c)
    assert jnp.allclose(out1, ref_tight, atol=5e-3, rtol=5e-3), \
        "mismatch vs bf16-consistent reference"

    # Loose check: full-f32 torch-equivalent forward (slack covers bf16 MXU operands).
    ref1 = _ref_layer_f32(a_norm, h, w1, b1, gamma1, beta1)
    assert jnp.allclose(out1, ref1, atol=1e-1, rtol=1e-1), \
        "mismatch vs f32 reference (layer 1)"

    # ---- fused 2-layer stack: ONE pallas_call for both layers ----
    w_stack = jnp.stack([w1_p, w2_p])     # (L, DP, DP) bf16
    b_stack = jnp.stack([b1_p, b2_p])     # (L, 1, DP)  f32
    g_stack = jnp.stack([g1_p, g2_p])
    bt_stack = jnp.stack([bt1_p, bt2_p])

    stack_fwd = jax.jit(gcn_stack_forward)
    out_stack_padded = stack_fwd(a_p, row_sum, h_p,
                                 w_stack, b_stack, g_stack, bt_stack)
    jax.block_until_ready(out_stack_padded)
    out_stack = out_stack_padded[:, :D_OUT]

    # Cross-check against two chained single-layer calls (activations kept
    # lane-padded and cast to bf16 between layers, exactly like the fused path).
    h2_p = jnp.zeros((NK, DP), jnp.float32).at[:N].set(out1_padded).astype(bf)
    out2_padded = layer_fwd(a_p, row_sum, h2_p, w2_p, b2_p, g2_p, bt2_p)
    assert jnp.allclose(out_stack, out2_padded[:, :D_OUT], atol=1e-4, rtol=1e-4), \
        "fused stack != chained single-layer calls"

    # Loose semantic check of the 2-layer stack vs full-f32 reference.
    ref2 = _ref_layer_f32(a_norm, ref1, w2, b2, gamma2, beta2)
    assert jnp.allclose(out_stack, ref2, atol=2e-1, rtol=2e-1), \
        "mismatch vs f32 reference (2-layer stack)"

    # TODO(synk): BatchNorm1d running-mean/var buffer updates (torch training
    # side effect) are not modeled; only the forward output is produced.

    print("KERNEL_OK")
</pallas_src>

<mosaic_0001>
module attributes {stable_mosaic.version = 11 : i64} {
  func.func @_gcn_layer_kernel(%arg0: memref<16x128xbf16, #tpu.memory_space<vmem>>, %arg1: memref<16x1xf32, #tpu.memory_space<vmem>>, %arg2: memref<128x128xbf16, #tpu.memory_space<vmem>>, %arg3: memref<128x128xbf16, #tpu.memory_space<vmem>>, %arg4: memref<1x128xf32, #tpu.memory_space<vmem>>, %arg5: memref<1x128xf32, #tpu.memory_space<vmem>>, %arg6: memref<1x128xf32, #tpu.memory_space<vmem>>, %arg7: memref<16x128xf32, #tpu.memory_space<vmem>>) attributes {dimension_semantics = [], scalar_prefetch = 0 : i64, scratch_operands = 0 : i64, tpu.core_type = #tpu.core_type<tc>} {
    %c0 = arith.constant 0 : index
    %c0_0 = arith.constant 0 : index
    %0 = vector.load %arg2[%c0, %c0_0] : memref<128x128xbf16, #tpu.memory_space<vmem>>, vector<128x128xbf16>
    %c0_1 = arith.constant 0 : index
    %c0_2 = arith.constant 0 : index
    %1 = vector.load %arg3[%c0_1, %c0_2] : memref<128x128xbf16, #tpu.memory_space<vmem>>, vector<128x128xbf16>
    %cst = arith.constant dense<0.000000e+00> : vector<128x128xf32>
    %2 = tpu.matmul %0, %1, %cst {dimension_numbers = #tpu.dot_dimension_numbers<[1], [0], [0], [1], [0, 0, 1, 1], [], []>} : vector<128x128xbf16>, vector<128x128xbf16>, vector<128x128xf32> -> vector<128x128xf32>
    %c0_3 = arith.constant 0 : index
    %c0_4 = arith.constant 0 : index
    %3 = vector.load %arg0[%c0_3, %c0_4] : memref<16x128xbf16, #tpu.memory_space<vmem>>, vector<16x128xbf16>
    %4 = arith.truncf %2 : vector<128x128xf32> to vector<128x128xbf16>
    %cst_5 = arith.constant dense<0.000000e+00> : vector<16x128xf32>
    %5 = tpu.matmul %3, %4, %cst_5 {dimension_numbers = #tpu.dot_dimension_numbers<[1], [0], [0], [1], [0, 0, 1, 1], [], []>} : vector<16x128xbf16>, vector<128x128xbf16>, vector<16x128xf32> -> vector<16x128xf32>
    %c0_6 = arith.constant 0 : index
    %c0_7 = arith.constant 0 : index
    %6 = vector.load %arg1[%c0_6, %c0_7] : memref<16x1xf32, #tpu.memory_space<vmem>>, vector<16x1xf32>
    %c0_8 = arith.constant 0 : index
    %c0_9 = arith.constant 0 : index
    %7 = vector.load %arg4[%c0_8, %c0_9] : memref<1x128xf32, #tpu.memory_space<vmem>>, vector<1x128xf32>
    %8 = vector.broadcast %6 : vector<16x1xf32> to vector<16x128xf32>
    %9 = vector.broadcast %7 : vector<1x128xf32> to vector<16x128xf32>
    %10 = arith.mulf %8, %9 : vector<16x128xf32>
    %11 = arith.addf %5, %10 : vector<16x128xf32>
    %c0_10 = arith.constant 0 : index
    %c0_11 = arith.constant 0 : index
    %12 = vector.load %arg5[%c0_10, %c0_11] : memref<1x128xf32, #tpu.memory_space<vmem>>, vector<1x128xf32>
    %c0_12 = arith.constant 0 : index
    %c0_13 = arith.constant 0 : index
    %13 = vector.load %arg6[%c0_12, %c0_13] : memref<1x128xf32, #tpu.memory_space<vmem>>, vector<1x128xf32>
    %cst_14 = arith.constant dense<0.000000e+00> : vector<128xf32>
    %14 = vector.multi_reduction <add>, %11, %cst_14 [0] : vector<16x128xf32> to vector<128xf32>
    %15 = vector.shape_cast %14 : vector<128xf32> to vector<1x128xf32>
    %16 = arith.mulf %11, %11 : vector<16x128xf32>
    %cst_15 = arith.constant dense<0.000000e+00> : vector<128xf32>
    %17 = vector.multi_reduction <add>, %16, %cst_15 [0] : vector<16x128xf32> to vector<128xf32>
    %18 = vector.shape_cast %17 : vector<128xf32> to vector<1x128xf32>
    %cst_16 = arith.constant 6.250000e-02 : f32
    %19 = vector.broadcast %cst_16 : f32 to vector<1x128xf32>
    %20 = arith.mulf %15, %19 : vector<1x128xf32>
    %cst_17 = arith.constant 6.250000e-02 : f32
    %21 = vector.broadcast %cst_17 : f32 to vector<1x128xf32>
    %22 = arith.mulf %18, %21 : vector<1x128xf32>
    %23 = arith.mulf %20, %20 : vector<1x128xf32>
    %24 = arith.subf %22, %23 : vector<1x128xf32>
    %cst_18 = arith.constant 0.000000e+00 : f32
    %25 = vector.broadcast %cst_18 : f32 to vector<1x128xf32>
    %26 = arith.maximumf %24, %25 : vector<1x128xf32>
    %cst_19 = arith.constant 9.99999974E-6 : f32
    %27 = vector.broadcast %cst_19 : f32 to vector<1x128xf32>
    %28 = arith.addf %26, %27 : vector<1x128xf32>
    %29 = math.rsqrt %28 : vector<1x128xf32>
    %30 = arith.mulf %12, %29 : vector<1x128xf32>
    %31 = arith.mulf %20, %30 : vector<1x128xf32>
    %32 = arith.subf %13, %31 : vector<1x128xf32>
    %33 = vector.broadcast %30 : vector<1x128xf32> to vector<16x128xf32>
    %34 = arith.mulf %11, %33 : vector<16x128xf32>
    %35 = vector.broadcast %32 : vector<1x128xf32> to vector<16x128xf32>
    %36 = arith.addf %34, %35 : vector<16x128xf32>
    %cst_20 = arith.constant 0.000000e+00 : f32
    %37 = vector.broadcast %cst_20 : f32 to vector<16x128xf32>
    %38 = arith.cmpf oge, %36, %37 : vector<16x128xf32>
    %cst_21 = arith.constant 0.00999999977 : f32
    %39 = vector.broadcast %cst_21 : f32 to vector<16x128xf32>
    %40 = arith.mulf %39, %36 : vector<16x128xf32>
    %41 = arith.select %38, %36, %40 : vector<16x128xi1>, vector<16x128xf32>
    %c0_22 = arith.constant 0 : index
    %c0_23 = arith.constant 0 : index
    %42 = vector.load %arg7[%c0_22, %c0_23] : memref<16x128xf32, #tpu.memory_space<vmem>>, vector<16x128xf32>
    tpu.vector_store %arg7[%c0_22, %c0_23], %41 {strides = array<i32>} : memref<16x128xf32, #tpu.memory_space<vmem>>, vector<16x128xf32>,
    return
  }
}

</mosaic_0001>

<bundles_post_ra>
// kernel: gcn_layer_forward.1
= control target key start
LH: loop header
LB: loop body
LE: loop exit
PB: predicated region body
PF: predicated region fallthrough
CT: control target
= control target key end

     0   :  { %12 = vsyncpa [#allocation3], 0  ;;  %s625_s0 = inlined_call_operand.vmem [shape: bf16[16,128], index: 0, kind: input, shape index: {}]   ;;  %s626_s1 = inlined_call_operand.vmem [shape: f32[16,1], index: 1, kind: input, shape index: {}]   ;;  %s627_s2 = inlined_call_operand.hbm [shape: bf16[128,128], index: 2, kind: input, shape index: {}]   ;;  %s628_s3 = inlined_call_operand.hbm [shape: bf16[128,128], index: 3, kind: input, shape index: {}]   ;;  %s629_s4 = inlined_call_operand.vmem [shape: f32[1,128], index: 4, kind: input, shape index: {}]   ;;  %s630_s5 = inlined_call_operand.vmem [shape: f32[1,128], index: 5, kind: input, shape index: {}]   ;;  %s631_s6 = inlined_call_operand.vmem [shape: f32[1,128], index: 6, kind: input, shape index: {}]   ;;  %s632_s7 = inlined_call_operand.hbm [shape: f32[16,128], index: 7, kind: output, shape index: {}]  }
   0x1   :  { %13 = vsyncpa [#allocation6], 0 }
   0x2   :  { %14 = vsyncpa [#allocation4], 0  ;;  %s23_s26 = sshll.u32 %s627_s2, 4  ;;  %s550_s27 = smov [#allocation2]   ;;  %s24_s26 = int_to_ptr.hbm [resolvable:$true] %s23_s26 }
   0x3   :  { %s25_s28 = sshll.u32 %s550_s27, 4  ;;  %s36_s8 = sshll.u32 %s628_s3, 4  ;;  %s26_s28 = int_to_ptr.vmem [resolvable:$true] %s25_s28  ;;  %s37_s8 = int_to_ptr.hbm [resolvable:$true] %s36_s8 }
   0x4   :  { %s551_s9 = smov 64   ;;  %s552_s10 = smov 4  }
   0x5   :  { %31 = dma.hbm_to_vmem [thread:$0]  %s24_s26, 1024, %s26_s28, [#allocation3], %s551_s9, %s551_s9, %s552_s10  }
   0x6   :  { %s553_s11 = smov [#allocation5]  }
   0x7   :  { %s38_s12 = sshll.u32 %s553_s11, 4  ;;  %s39_s12 = int_to_ptr.vmem [resolvable:$true] %s38_s12 }
   0x8   :  { %44 = dma.hbm_to_vmem [thread:$0]  %s37_s8, 1024, %s39_s12, [#allocation6], %s551_s9, %s551_s9, %s552_s10  }
   0x9   :  { %544 = dma.done.wait [#allocation3], 1024  }
   0xa   :  { %545 = vsyncadd [#allocation3], 4294966272 }
   0xb   :  { %546 = dma.done.wait [#allocation6], 1024  }
   0xc   :  { %547 = vsyncadd [#allocation6], 4294966272  ;;  %v442_v0 = vld [vmem:[#allocation5 + $0x38] sm:$0xff]  ;;  %v441_v1 = vld [vmem:[#allocation5 + $0x30] sm:$0xff]  ;;  %v554_v28 = vmov 0   ;;  %s555_s20 = smov [#allocation7]  }
   0xd   :  { %445 = vmatpush.bf16.msra.mxu3 %v442_v0  ;;  %444 = vmatpush.bf16.msra.mxu2 %v442_v0  ;;  %v440_v2 = vld [vmem:[#allocation5 + $0x28] sm:$0xff]  ;;  %v439_v3 = vld [vmem:[#allocation5 + $0x20] sm:$0xff]  ;;  %v438_v4 = vld [vmem:[#allocation5 + $0x18] sm:$0xff]  ;;  %s343_s21 = sshll.u32 %s555_s20, 4  ;;  %s345_s23 = sshll.u32 %s632_s7, 4  ;;  %s344_s21 = int_to_ptr.vmem [resolvable:$true] %s343_s21  ;;  %s346_s23 = int_to_ptr.hbm [resolvable:$true] %s345_s23 }
   0xe   :  { %187 = vmatpush.bf16.msra.mxu0 %v442_v0  ;;  %v437_v5 = vld [vmem:[#allocation5 + $0x10] sm:$0xff]  ;;  %v436_v6 = vld [vmem:[#allocation5 + $0x8] sm:$0xff]  ;;  %v435_v7 = vld [vmem:[#allocation5] sm:$0xff]  ;;  %468 = vset.pattern.permute.xlu0 %v554_v28  ;;  %s557_s24 = smov 8  }
   0xf   :  { %v432_v8 = vld [vmem:[#allocation2 + $0x28] sm:$0xff]  ;;  %v429_v9 = vld [vmem:[#allocation2 + $0x10] sm:$0xff]  ;;  %v427_v10 = vld [vmem:[#allocation2] sm:$0xff] }
  0x10   :  { %v433_v11 = vld [vmem:[#allocation2 + $0x30] sm:$0xff]  ;;  %v430_v12 = vld [vmem:[#allocation2 + $0x18] sm:$0xff]  ;;  %v428_v13 = vld [vmem:[#allocation2 + $0x8] sm:$0xff] }
  0x11   :  { %447 = vmatpush.bf16.msra.mxu3 %v441_v1  ;;  %446 = vmatpush.bf16.msra.mxu2 %v441_v1  ;;  %v434_v14 = vld [vmem:[#allocation2 + $0x38] sm:$0xff]  ;;  %v431_v15 = vld [vmem:[#allocation2 + $0x20] sm:$0xff]  ;;  %v247_v33 = vld [vmem:[%s626_s1 + $0x8] sm:$0xff] }
  0x12   :  { %188 = vmatpush.bf16.msra.mxu0 %v441_v1  ;;  %v246_v31 = vld [vmem:[%s626_s1] sm:$0xff] }
  0x13   :  { %251 = vperm.xlu0 %468, %v246_v31   ;;  %v443_v43 = vld [vmem:[%s625_s0] sm:$0xff] }
  0x14   :  { %v469_v45 = vld [vmem:[%s629_s4] ss:$0 sm:$0xff] }
  0x15   :  { %449 = vmatpush.bf16.msra.mxu3 %v440_v2  ;;  %448 = vmatpush.bf16.msra.mxu2 %v440_v2 }
  0x16   :  { %189 = vmatpush.bf16.msra.mxu0 %v440_v2 }
  0x19   :  { %451 = vmatpush.bf16.msra.mxu3 %v439_v3  ;;  %450 = vmatpush.bf16.msra.mxu2 %v439_v3 }
  0x1a   :  { %190 = vmatpush.bf16.msra.mxu0 %v439_v3 }
  0x1b   :  { %256 = vperm.xlu0 %468, %v247_v33  }
  0x1d   :  { %453 = vmatpush.bf16.msra.mxu3 %v438_v4  ;;  %452 = vmatpush.bf16.msra.mxu2 %v438_v4 }
  0x1e   :  { %191 = vmatpush.bf16.msra.mxu0 %v438_v4 }
  0x21   :  { %455 = vmatpush.bf16.msra.mxu3 %v437_v5  ;;  %454 = vmatpush.bf16.msra.mxu2 %v437_v5 }
  0x22   :  { %192 = vmatpush.bf16.msra.mxu0 %v437_v5 }
  0x25   :  { %457 = vmatpush.bf16.msra.mxu3 %v436_v6  ;;  %456 = vmatpush.bf16.msra.mxu2 %v436_v6 }
  0x26   :  { %193 = vmatpush.bf16.msra.mxu0 %v436_v6 }
  0x29   :  { %459 = vmatpush.bf16.msra.mxu3 %v435_v7  ;;  %458 = vmatpush.bf16.msra.mxu2 %v435_v7 }
  0x2a   :  { %194 = vmatpush.bf16.msra.mxu0 %v435_v7 }
  0x2c   :  { %220 = vmatmul.bf16.vlgmr.msra.gmra.mxu3 %v432_v8  ;;  %205 = vmatmul.bf16.vlgmr.msra.gmra.mxu2 %v429_v9 }
  0x2d   :  { %195 = vmatmul.bf16.vlgmr.msra.gmra.mxu0 %v427_v10 }
  0x3c   :  { %225 = vmatmul.bf16.gmra.mxu3 %v433_v11  ;;  %210 = vmatmul.bf16.gmra.mxu2 %v430_v12 }
  0x3d   :  { %200 = vmatmul.bf16.gmra.mxu0 %v428_v13 }
  0x4c   :  { %230 = vmatmul.bf16.gmra.mxu3 %v434_v14  ;;  %215 = vmatmul.bf16.gmra.mxu2 %v431_v15 }
  0x85   :  { %v252_v44 = vpop.permute.xlu0 %251 }
  0x86   :  { %v262_v47 = vmul.f32 %v469_v45, %v252_v44 }
  0x8d   :  { %v257_v48 = vpop.permute.xlu0 %256 }
  0x8e   :  { %v263_v49 = vmul.f32 %v469_v45, %v257_v48 }
  0xaa   :  { %v196_v24 = vpop.f32.mrf.mxu0 }
  0xaf   :  { %v221_v16 = vpop.f32.mrf.mxu3  ;;  %v206_v17 = vpop.f32.mrf.mxu2 }
  0xb2   :  { %v198_v30 = vpop.f32.mrf.mxu0 }
  0xb3   :  { %v238_v42 = vpack.c.bf16 %v198_v30, %v196_v24 }
  0xb7   :  { %v223_v18 = vpop.f32.mrf.mxu3  ;;  %v208_v19 = vpop.f32.mrf.mxu2 }
  0xb8   :  { %v243_v34 = vpack.c.bf16 %v223_v18, %v221_v16  ;;  %v240_v39 = vpack.c.bf16 %v208_v19, %v206_v17  ;;  %v284_v16 = vld [vmem:[%s630_s5] sm:$0x1] }
  0xba   :  { %v201_v36 = vpop.f32.mrf.mxu0 }
  0xbf   :  { %v226_v20 = vpop.f32.mrf.mxu3  ;;  %v211_v21 = vpop.f32.mrf.mxu2 }
  0xc2   :  { %v203_v40 = vpop.f32.mrf.mxu0 }
  0xc3   :  { %v239_v41 = vpack.c.bf16 %v203_v40, %v201_v36 }
  0xc7   :  { %v228_v22 = vpop.f32.mrf.mxu3  ;;  %v213_v23 = vpop.f32.mrf.mxu2 }
  0xc8   :  { %v244_v32 = vpack.c.bf16 %v228_v22, %v226_v20  ;;  %v241_v38 = vpack.c.bf16 %v213_v23, %v211_v21  ;;  %v285_v20 = vld [vmem:[%s631_s6] sm:$0x1]  ;;  %s556_s6 = smov 128  }
  0xcf   :  { %v231_v25 = vpop.f32.mrf.mxu3  ;;  %v216_v26 = vpop.f32.mrf.mxu2 }
  0xd7   :  { %v233_v27 = vpop.f32.mrf.mxu3  ;;  %v218_v35 = vpop.f32.mrf.mxu2 }
  0xd8   :  { %v245_v29 = vpack.c.bf16 %v233_v27, %v231_v25  ;;  %v242_v37 = vpack.c.bf16 %v218_v35, %v216_v26 }
  0xda   :  { %270 = vmatpush.bf16.msra.mxu1 %v245_v29 }
  0xde   :  { %271 = vmatpush.bf16.msra.mxu1 %v244_v32 }
  0xe2   :  { %272 = vmatpush.bf16.msra.mxu1 %v243_v34 }
  0xe6   :  { %273 = vmatpush.bf16.msra.mxu1 %v242_v37 }
  0xea   :  { %274 = vmatpush.bf16.msra.mxu1 %v241_v38 }
  0xee   :  { %275 = vmatpush.bf16.msra.mxu1 %v240_v39 }
  0xf2   :  { %276 = vmatpush.bf16.msra.mxu1 %v239_v41 }
  0xf6   :  { %277 = vmatpush.bf16.msra.mxu1 %v238_v42 }
  0xf9   :  { %278 = vmatmul.bf16.vlgmr.msra.gmra.mxu1 %v443_v43 }
 0x176   :  { %v279_v46 = vpop.f32.mrf.mxu1 }
 0x177   :  { %v280_v50 = vadd.f32 %v279_v46, %v262_v47 }
 0x179   :  { %v293_v53 = vmul.f32 %v280_v50, %v280_v50 }
 0x17e   :  { %v281_v51 = vpop.f32.mrf.mxu1 }
 0x17f   :  { %v282_v52 = vadd.f32 %v281_v51, %v263_v49 }
 0x181   :  { %v286_v54 = vadd.f32 %v282_v52, %v280_v50  ;;  %v294_v55 = vmul.f32 %v282_v52, %v282_v52 }
 0x183   :  { %v287_v56 = vrot.slane %v286_v54, 4  ;;  %v295_v57 = vadd.f32 %v294_v55, %v293_v53 }
 0x185   :  { %v288_v58 = vadd.f32 %v287_v56, %v286_v54  ;;  %v296_v59 = vrot.slane %v295_v57, 4 }
 0x187   :  { %v289_v60 = vrot.slane %v288_v58, 2  ;;  %v297_v61 = vadd.f32 %v296_v59, %v295_v57 }
 0x189   :  { %v290_v62 = vadd.f32 %v289_v60, %v288_v58  ;;  %v298_v63 = vrot.slane %v297_v61, 2 }
 0x18b   :  { %v291_v0 = vrot.slane %v290_v62, 1  ;;  %v299_v1 = vadd.f32 %v298_v63, %v297_v61 }
 0x18d   :  { %v292_v2 = vadd.f32 %v291_v0, %v290_v62  ;;  %v300_v3 = vrot.slane %v299_v1, 1 }
 0x18f   :  { %v301_v4 = vadd.f32 %v300_v3, %v299_v1  ;;  %v302_v5 = vmul.f32 0.0625, %v292_v2 }
 0x191   :  { %v303_v6 = vmul.f32 0.0625, %v301_v4  ;;  %v304_v7 = vmul.f32 %v302_v5, %v302_v5 }
 0x193   :  { %v305_v8 = vsub.f32 %v303_v6, %v304_v7 }
 0x195   :  { %v306_v9 = vmax.f32 %v305_v8, 0.0 }
 0x197   :  { %v307_v10 = vadd.f32 1e-05, %v306_v9 }
 0x199   :  { %470 = vrsqrt.f32 %v307_v10  ;;  %vm314_vm1 = vweird.f32 %v307_v10 }
 0x19f   :  { %v471_v11 = vpop.eup %470 }
 0x1a0   :  { %v309_v12 = vmul.f32 %v471_v11, %v307_v10  ;;  %vm315_vm0 = vweird.f32 %v471_v11 }
 0x1a1   :  { %vm316_vm2 = vmor %vm314_vm1, %vm315_vm0 }
 0x1a2   :  { %v310_v13 = vmul.f32 %v471_v11, %v309_v12 }
 0x1a4   :  { %v311_v14 = vmul.f32 0.5, %v310_v13 }
 0x1a6   :  { %v312_v15 = vsub.f32 1.5, %v311_v14 }
 0x1a8   :  { %v313_v17 = vmul.f32 %v471_v11, %v312_v15 }
 0x1aa   :  { %v317_v18 = vsel %vm316_vm2, %v471_v11, %v313_v17 }
 0x1ab   :  { %v318_v19 = vmul.f32 %v317_v18, %v284_v16 }
 0x1ad   :  { %v319_v21 = vmul.f32 %v318_v19, %v302_v5  ;;  %v322_v22 = vperm.slane %v318_v19, 0 }
 0x1af   :  { %v320_v23 = vsub.f32 %v285_v20, %v319_v21  ;;  %v324_v24 = vmul.f32 %v322_v22, %v280_v50  ;;  %v325_v25 = vmul.f32 %v322_v22, %v282_v52 }
 0x1b1   :  { %v327_v26 = vperm.slane %v320_v23, 0 }
 0x1b3   :  { %v329_v27 = vadd.f32 %v327_v26, %v324_v24  ;;  %v330_v28 = vadd.f32 %v327_v26, %v325_v25 }
 0x1b5   :  { %vm332_vm3 = vcmp.ge.f32.partialorder %v330_v28, 0.0  ;;  %v333_v29 = vmul.f32 0.01, %v329_v27  ;;  %v334_v30 = vmul.f32 0.01, %v330_v28  ;;  %vm331_vm4 = vcmp.ge.f32.partialorder %v329_v27, 0.0 }
 0x1b7   :  { %v336_v31 = vsel %vm332_vm3, %v330_v28, %v334_v30  ;;  %v335_v32 = vsel %vm331_vm4, %v329_v27, %v333_v29 }
 0x1b8   :  { %338 = vst [vmem:[#allocation7 + $0x8] sm:$0xff] %v336_v31 }
 0x1b9   :  { %337 = vst [vmem:[#allocation7] sm:$0xff] %v335_v32 }
 0x1ba   :  { %351 = dma.vmem_to_hbm [thread:$0]  %s344_s21, 256, %s346_s23, [#allocation4], %s556_s6, %s556_s6, %s557_s24  }
 0x1bb   :  { %548 = dma.done.wait [#allocation4], 256  }
 0x1bc   :  { %549 = vsyncadd [#allocation4], 4294967040 }
 0x1bd   :  { %356 = vsyncpa [#allocation3], 1 }
 0x1be   :  { %357 = vsyncpa [#allocation6], 1 }
 0x1bf   :  { %358 = vsyncpa [#allocation4], 1 }

</bundles_post_ra>
